<compile_context>
chip_gen: v6e
topology: v6e:2x2x1
jax: 0.10.0
libtpu: 0.0.40
codegen_flags: <defaults>
</compile_context>

<pallas_src>
import functools

import jax
import jax.numpy as jnp
from jax.experimental import pallas as pl
from jax.experimental.pallas import tpu as pltpu

_EPS = 1e-5
_LANE = 128


def _round_up(n, m):
    return ((n + m - 1) // m) * m


def _hash_random_bits(shape, seed):
    """Counter-based uint32 random bits (murmur3 fmix32 finalizer).

    Pure jnp integer ops -> lowers on compiled TPU *and* in interpret mode.
    `seed` is a Python int baked in at trace time.
    """
    rows = jax.lax.broadcasted_iota(jnp.int32, shape, 0)
    cols = jax.lax.broadcasted_iota(jnp.int32, shape, 1)
    idx = (rows * shape[1] + cols).astype(jnp.uint32)
    h = idx + jnp.uint32((int(seed) * 0x9E3779B9) & 0xFFFFFFFF)
    h = h ^ (h >> 16)
    h = h * jnp.uint32(0x85EBCA6B)
    h = h ^ (h >> 13)
    h = h * jnp.uint32(0xC2B2AE35)
    h = h ^ (h >> 16)
    return h


def _dropout(x, rate, seed):
    """Training-mode dropout: keep with prob (1-rate), scale kept by 1/(1-rate)."""
    if rate <= 0.0:
        return x
    # Integer threshold compare on raw bits (no int->float convert).
    threshold = jnp.uint32(min(int(round(rate * 4294967296.0)), 4294967295))
    bits = _hash_random_bits(x.shape, seed)
    keep = bits >= threshold
    return jnp.where(keep, x * (1.0 / (1.0 - rate)), 0.0)


def _fused_netblock_kernel(*refs, nlayer, act_list, dropout_rate, noise_rate,
                           base_seed):
    # refs = (x, [w, b, gamma, beta] * nlayer, out)
    x_ref = refs[0]
    o_ref = refs[1 + 4 * nlayer]

    x = x_ref[...].astype(jnp.float32)

    # Input noise dropout.
    x = _dropout(x, noise_rate, base_seed)

    for i in range(nlayer):
        w = refs[1 + 4 * i][...]
        b = refs[2 + 4 * i][...]
        gamma = refs[3 + 4 * i][...]
        beta = refs[4 + 4 * i][...]

        # Linear: (B, Din) @ (Din, Dout) + (1, Dout) on the MXU.
        y = jnp.dot(x, w, preferred_element_type=jnp.float32) + b

        # BatchNorm1d, training mode: batch mean + biased variance (two-pass,
        # numerically safer than E[x^2]-E[x]^2).
        mean = jnp.mean(y, axis=0, keepdims=True)
        var = jnp.mean((y - mean) ** 2, axis=0, keepdims=True)
        y = (y - mean) * jax.lax.rsqrt(var + _EPS)
        y = y * gamma + beta

        # Activation.
        act = act_list[i]
        if act == "relu":
            y = jnp.maximum(y, 0.0)
        elif act == "sigmoid":
            y = jax.nn.sigmoid(y)
        elif act in ("identity", "none"):
            pass
        else:
            raise ValueError(f"unknown activation {act}")

        # Dropout (skipped on the last layer, matching the PyTorch module).
        if i != nlayer - 1:
            y = _dropout(y, dropout_rate, base_seed + 1 + i)

        x = y

    o_ref[...] = x.astype(o_ref.dtype)


def _vmem_spec():
    return pl.BlockSpec(memory_space=pltpu.MemorySpace.VMEM)


def init_netblock_params(key, dim_list):
    """Deterministic parameter init matching nn.Linear/nn.BatchNorm1d shapes.

    Weights are stored pre-transposed as (Din, Dout)."""
    params = []
    nlayer = len(dim_list) - 1
    for i in range(nlayer):
        fan_in, fan_out = dim_list[i], dim_list[i + 1]
        key, kw, kb = jax.random.split(key, 3)
        # xavier_uniform_ on weight.
        bound_w = (6.0 / (fan_in + fan_out)) ** 0.5
        w = jax.random.uniform(kw, (fan_in, fan_out), jnp.float32,
                               minval=-bound_w, maxval=bound_w)
        # nn.Linear default bias init: U(-1/sqrt(fan_in), 1/sqrt(fan_in)).
        bound_b = 1.0 / (fan_in ** 0.5)
        b = jax.random.uniform(kb, (1, fan_out), jnp.float32,
                               minval=-bound_b, maxval=bound_b)
        gamma = jnp.ones((1, fan_out), jnp.float32)
        beta = jnp.zeros((1, fan_out), jnp.float32)
        params.append((w, b, gamma, beta))
    return params


def netblock_forward(x, params, act_list, dropout_rate, noise_rate, base_seed=0):
    """Single fused pallas_call for the whole NetBlock forward (training mode)."""
    nlayer = len(params)
    B, din = x.shape
    dout_logical = params[-1][0].shape[1]

    # Pad feature (lane) dims up to multiples of 128 for lane-dense matmuls and
    # stores.  The batch axis is NOT padded (BatchNorm stats use the real batch).
    din_pad = _round_up(din, _LANE)
    flat_inputs = [jnp.pad(x, ((0, 0), (0, din_pad - din)))]
    prev_pad = din_pad
    for (w, b, gamma, beta) in params:
        di, do = w.shape
        do_pad = _round_up(do, _LANE)
        flat_inputs.append(jnp.pad(w, ((0, prev_pad - di), (0, do_pad - do))))
        flat_inputs.append(jnp.pad(b, ((0, 0), (0, do_pad - do))))
        flat_inputs.append(jnp.pad(gamma, ((0, 0), (0, do_pad - do)),
                                   constant_values=1.0))
        flat_inputs.append(jnp.pad(beta, ((0, 0), (0, do_pad - do))))
        prev_pad = do_pad

    kernel = functools.partial(
        _fused_netblock_kernel,
        nlayer=nlayer,
        act_list=tuple(act_list),
        dropout_rate=float(dropout_rate),
        noise_rate=float(noise_rate),
        base_seed=int(base_seed),
    )

    out_padded = pl.pallas_call(
        kernel,
        out_shape=jax.ShapeDtypeStruct((B, prev_pad), x.dtype),
        in_specs=[_vmem_spec()] * len(flat_inputs),
        out_specs=_vmem_spec(),
    )(*flat_inputs)

    return out_padded[:, :dout_logical]


def _reference_forward_no_dropout(x, params, act_list):
    """Pure-JAX reference (dropout rates = 0) for a correctness sanity check."""
    for i, (w, b, gamma, beta) in enumerate(params):
        y = x @ w + b
        mean = y.mean(axis=0, keepdims=True)
        var = ((y - mean) ** 2).mean(axis=0, keepdims=True)
        y = (y - mean) / jnp.sqrt(var + _EPS) * gamma + beta
        if act_list[i] == "relu":
            y = jnp.maximum(y, 0.0)
        elif act_list[i] == "sigmoid":
            y = jax.nn.sigmoid(y)
        x = y
    return x


if __name__ == "__main__":
    key = jax.random.PRNGKey(0)

    # Small shapes consistent with the module: nlayer=2, dim_list=[16, 32, 8].
    dim_list = [16, 32, 8]
    act_list = ["relu", "sigmoid"]
    dropout_rate = 0.2
    noise_rate = 0.1
    batch = 8  # multiple of 8: fills the f32 sublane group exactly

    key, kx, kp = jax.random.split(key, 3)
    x = jax.random.normal(kx, (batch, dim_list[0]), jnp.float32)
    params = init_netblock_params(kp, dim_list)

    # Deterministic-path sanity check (dropout disabled) against pure JAX.
    out_det = netblock_forward(x, params, act_list, 0.0, 0.0)
    out_det = jax.block_until_ready(out_det)
    ref_det = _reference_forward_no_dropout(x, params, act_list)
    assert jnp.allclose(out_det, ref_det, rtol=1e-4, atol=1e-4), "mismatch vs reference"

    # Full training-mode forward with noise dropout + per-layer dropout.
    out = netblock_forward(x, params, act_list, dropout_rate, noise_rate,
                           base_seed=0)
    out = jax.block_until_ready(out)

    assert out.shape == (batch, dim_list[-1])
    assert out.dtype == jnp.float32
    assert bool(jnp.all(jnp.isfinite(out)))
    print("KERNEL_OK")
</pallas_src>

<mosaic_0001>
module attributes {stable_mosaic.version = 11 : i64} {
  func.func @_fused_netblock_kernel(%arg0: memref<8x128xf32, #tpu.memory_space<vmem>>, %arg1: memref<128x128xf32, #tpu.memory_space<vmem>>, %arg2: memref<1x128xf32, #tpu.memory_space<vmem>>, %arg3: memref<1x128xf32, #tpu.memory_space<vmem>>, %arg4: memref<1x128xf32, #tpu.memory_space<vmem>>, %arg5: memref<128x128xf32, #tpu.memory_space<vmem>>, %arg6: memref<1x128xf32, #tpu.memory_space<vmem>>, %arg7: memref<1x128xf32, #tpu.memory_space<vmem>>, %arg8: memref<1x128xf32, #tpu.memory_space<vmem>>, %arg9: memref<8x128xf32, #tpu.memory_space<vmem>>) attributes {dimension_semantics = [], scalar_prefetch = 0 : i64, scratch_operands = 0 : i64, tpu.core_type = #tpu.core_type<tc>} {
    %c0 = arith.constant 0 : index
    %c0_0 = arith.constant 0 : index
    %0 = vector.load %arg0[%c0, %c0_0] : memref<8x128xf32, #tpu.memory_space<vmem>>, vector<8x128xf32>
    %c0_1 = arith.constant 0 : index
    %c0_2 = arith.constant 0 : index
    %1 = vector.load %arg1[%c0_1, %c0_2] : memref<128x128xf32, #tpu.memory_space<vmem>>, vector<128x128xf32>
    %c0_3 = arith.constant 0 : index
    %c0_4 = arith.constant 0 : index
    %2 = vector.load %arg2[%c0_3, %c0_4] : memref<1x128xf32, #tpu.memory_space<vmem>>, vector<1x128xf32>
    %c0_5 = arith.constant 0 : index
    %c0_6 = arith.constant 0 : index
    %3 = vector.load %arg3[%c0_5, %c0_6] : memref<1x128xf32, #tpu.memory_space<vmem>>, vector<1x128xf32>
    %c0_7 = arith.constant 0 : index
    %c0_8 = arith.constant 0 : index
    %4 = vector.load %arg4[%c0_7, %c0_8] : memref<1x128xf32, #tpu.memory_space<vmem>>, vector<1x128xf32>
    %cst = arith.constant dense<0.000000e+00> : vector<8x128xf32>
    %5 = tpu.matmul %0, %1, %cst {dimension_numbers = #tpu.dot_dimension_numbers<[1], [0], [0], [1], [0, 0, 1, 1], [], []>} : vector<8x128xf32>, vector<128x128xf32>, vector<8x128xf32> -> vector<8x128xf32>
    %6 = vector.broadcast %2 : vector<1x128xf32> to vector<8x128xf32>
    %7 = arith.addf %5, %6 : vector<8x128xf32>
    %cst_9 = arith.constant dense<0.000000e+00> : vector<128xf32>
    %8 = vector.multi_reduction <add>, %7, %cst_9 [0] : vector<8x128xf32> to vector<128xf32>
    %9 = vector.shape_cast %8 : vector<128xf32> to vector<1x128xf32>
    %cst_10 = arith.constant 8.000000e+00 : f32
    %10 = vector.broadcast %cst_10 : f32 to vector<1x128xf32>
    %11 = arith.divf %9, %10 : vector<1x128xf32>
    %12 = vector.broadcast %11 : vector<1x128xf32> to vector<8x128xf32>
    %13 = arith.subf %7, %12 : vector<8x128xf32>
    %14 = arith.mulf %13, %13 : vector<8x128xf32>
    %cst_11 = arith.constant dense<0.000000e+00> : vector<128xf32>
    %15 = vector.multi_reduction <add>, %14, %cst_11 [0] : vector<8x128xf32> to vector<128xf32>
    %16 = vector.shape_cast %15 : vector<128xf32> to vector<1x128xf32>
    %cst_12 = arith.constant 8.000000e+00 : f32
    %17 = vector.broadcast %cst_12 : f32 to vector<1x128xf32>
    %18 = arith.divf %16, %17 : vector<1x128xf32>
    %19 = vector.broadcast %11 : vector<1x128xf32> to vector<8x128xf32>
    %20 = arith.subf %7, %19 : vector<8x128xf32>
    %cst_13 = arith.constant 9.99999974E-6 : f32
    %21 = vector.broadcast %cst_13 : f32 to vector<1x128xf32>
    %22 = arith.addf %18, %21 : vector<1x128xf32>
    %23 = math.rsqrt %22 : vector<1x128xf32>
    %24 = vector.broadcast %23 : vector<1x128xf32> to vector<8x128xf32>
    %25 = arith.mulf %20, %24 : vector<8x128xf32>
    %26 = vector.broadcast %3 : vector<1x128xf32> to vector<8x128xf32>
    %27 = arith.mulf %25, %26 : vector<8x128xf32>
    %28 = vector.broadcast %4 : vector<1x128xf32> to vector<8x128xf32>
    %29 = arith.addf %27, %28 : vector<8x128xf32>
    %cst_14 = arith.constant 0.000000e+00 : f32
    %30 = vector.broadcast %cst_14 : f32 to vector<8x128xf32>
    %31 = arith.maximumf %29, %30 : vector<8x128xf32>
    %c0_15 = arith.constant 0 : index
    %c0_16 = arith.constant 0 : index
    %32 = vector.load %arg5[%c0_15, %c0_16] : memref<128x128xf32, #tpu.memory_space<vmem>>, vector<128x128xf32>
    %c0_17 = arith.constant 0 : index
    %c0_18 = arith.constant 0 : index
    %33 = vector.load %arg6[%c0_17, %c0_18] : memref<1x128xf32, #tpu.memory_space<vmem>>, vector<1x128xf32>
    %c0_19 = arith.constant 0 : index
    %c0_20 = arith.constant 0 : index
    %34 = vector.load %arg7[%c0_19, %c0_20] : memref<1x128xf32, #tpu.memory_space<vmem>>, vector<1x128xf32>
    %c0_21 = arith.constant 0 : index
    %c0_22 = arith.constant 0 : index
    %35 = vector.load %arg8[%c0_21, %c0_22] : memref<1x128xf32, #tpu.memory_space<vmem>>, vector<1x128xf32>
    %cst_23 = arith.constant dense<0.000000e+00> : vector<8x128xf32>
    %36 = tpu.matmul %31, %32, %cst_23 {dimension_numbers = #tpu.dot_dimension_numbers<[1], [0], [0], [1], [0, 0, 1, 1], [], []>} : vector<8x128xf32>, vector<128x128xf32>, vector<8x128xf32> -> vector<8x128xf32>
    %37 = vector.broadcast %33 : vector<1x128xf32> to vector<8x128xf32>
    %38 = arith.addf %36, %37 : vector<8x128xf32>
    %cst_24 = arith.constant dense<0.000000e+00> : vector<128xf32>
    %39 = vector.multi_reduction <add>, %38, %cst_24 [0] : vector<8x128xf32> to vector<128xf32>
    %40 = vector.shape_cast %39 : vector<128xf32> to vector<1x128xf32>
    %cst_25 = arith.constant 8.000000e+00 : f32
    %41 = vector.broadcast %cst_25 : f32 to vector<1x128xf32>
    %42 = arith.divf %40, %41 : vector<1x128xf32>
    %43 = vector.broadcast %42 : vector<1x128xf32> to vector<8x128xf32>
    %44 = arith.subf %38, %43 : vector<8x128xf32>
    %45 = arith.mulf %44, %44 : vector<8x128xf32>
    %cst_26 = arith.constant dense<0.000000e+00> : vector<128xf32>
    %46 = vector.multi_reduction <add>, %45, %cst_26 [0] : vector<8x128xf32> to vector<128xf32>
    %47 = vector.shape_cast %46 : vector<128xf32> to vector<1x128xf32>
    %cst_27 = arith.constant 8.000000e+00 : f32
    %48 = vector.broadcast %cst_27 : f32 to vector<1x128xf32>
    %49 = arith.divf %47, %48 : vector<1x128xf32>
    %50 = vector.broadcast %42 : vector<1x128xf32> to vector<8x128xf32>
    %51 = arith.subf %38, %50 : vector<8x128xf32>
    %cst_28 = arith.constant 9.99999974E-6 : f32
    %52 = vector.broadcast %cst_28 : f32 to vector<1x128xf32>
    %53 = arith.addf %49, %52 : vector<1x128xf32>
    %54 = math.rsqrt %53 : vector<1x128xf32>
    %55 = vector.broadcast %54 : vector<1x128xf32> to vector<8x128xf32>
    %56 = arith.mulf %51, %55 : vector<8x128xf32>
    %57 = vector.broadcast %34 : vector<1x128xf32> to vector<8x128xf32>
    %58 = arith.mulf %56, %57 : vector<8x128xf32>
    %59 = vector.broadcast %35 : vector<1x128xf32> to vector<8x128xf32>
    %60 = arith.addf %58, %59 : vector<8x128xf32>
    %61 = arith.negf %60 : vector<8x128xf32>
    %62 = math.exp %61 : vector<8x128xf32>
    %cst_29 = arith.constant 1.000000e+00 : f32
    %63 = vector.broadcast %cst_29 : f32 to vector<8x128xf32>
    %64 = arith.addf %63, %62 : vector<8x128xf32>
    %65 = arith.divf %63, %64 : vector<8x128xf32>
    %c0_30 = arith.constant 0 : index
    %c0_31 = arith.constant 0 : index
    %66 = vector.load %arg9[%c0_30, %c0_31] : memref<8x128xf32, #tpu.memory_space<vmem>>, vector<8x128xf32>
    tpu.vector_store %arg9[%c0_30, %c0_31], %65 {strides = array<i32>} : memref<8x128xf32, #tpu.memory_space<vmem>>, vector<8x128xf32>,
    return
  }
}

</mosaic_0001>

<bundles_post_ra>
// kernel: tpu_custom_call.1
= control target key start
LH: loop header
LB: loop body
LE: loop exit
PB: predicated region body
PF: predicated region fallthrough
CT: control target
= control target key end

     0   :  { %14 = vsyncpa [#allocation3], 0  ;;  %s689_s0 = inlined_call_operand.hbm [shape: f32[8,128], index: 0, kind: input, shape index: {}]   ;;  %s690_s1 = inlined_call_operand.hbm [shape: f32[128,128], index: 1, kind: input, shape index: {}]   ;;  %s691_s2 = inlined_call_operand.vmem [shape: f32[1,128], index: 2, kind: input, shape index: {}]   ;;  %s692_s3 = inlined_call_operand.vmem [shape: f32[1,128], index: 3, kind: input, shape index: {}]   ;;  %s693_s4 = inlined_call_operand.vmem [shape: f32[1,128], index: 4, kind: input, shape index: {}]   ;;  %s694_s5 = inlined_call_operand.hbm [shape: f32[128,128], index: 5, kind: input, shape index: {}]   ;;  %s695_s6 = inlined_call_operand.vmem [shape: f32[1,128], index: 6, kind: input, shape index: {}]   ;;  %s696_s7 = inlined_call_operand.vmem [shape: f32[1,128], index: 7, kind: input, shape index: {}]   ;;  %s697_s8 = inlined_call_operand.vmem [shape: f32[1,128], index: 8, kind: input, shape index: {}]   ;;  %s698_s9 = inlined_call_operand.hbm [shape: f32[8,128], index: 9, kind: output, shape index: {}]  }
   0x1   :  { %15 = vsyncpa [#allocation6], 0 }
   0x2   :  { %16 = vsyncpa [#allocation4], 0  ;;  %s567_s30 = smov [#allocation5]  }
   0x3   :  { %s32_s10 = sshll.u32 %s567_s30, 4  ;;  %s33_s10 = int_to_ptr.vmem [resolvable:$true] %s32_s10 }
   0x4   :  { %s489_s11 = scalar_lea.vmem %s33_s10, 2048  ;;  %p494_p1 = scmp.lt.s32.totalorder %s33_s10, %s33_s10 }
   0x5   :  { %p490_p0 = scmp.ne.s32.totalorder %s33_s10, %s489_s11  ;;  %p495_p2 = scmp.lt.s32.totalorder %s489_s11, %s489_s11 }
   0x7   :  { %p496_p3 = por %p495_p2, %p494_p1 }
   0x9   :  { %p497_p4 = pnand %p496_p3, %p490_p0 }
   0xb   :  { %500 = shalt.err (!%p497_p4)
}
   0xc   :  { %s568_s12 = smov 128   ;;  %s569_s13 = smov 8  }
   0xd   :  { %38 = dma.hbm_to_vmem [thread:$0]  %s690_s1, 2048, %s33_s10, [#allocation6], %s568_s12, %s568_s12, %s569_s13  }
   0xe   :  { %s570_s16 = smov [#allocation2]   ;;  %s571_s18 = smov [#allocation7]  }
   0xf   :  { %s23_s17 = sshll.u32 %s570_s16, 4  ;;  %s50_s19 = sshll.u32 %s571_s18, 4  ;;  %s24_s17 = int_to_ptr.vmem [resolvable:$true] %s23_s17  ;;  %s51_s19 = int_to_ptr.vmem [resolvable:$true] %s50_s19 }
  0x10   :  { %s509_s20 = scalar_lea.vmem %s24_s17, 128  ;;  %p514_p6 = scmp.lt.s32.totalorder %s24_s17, %s24_s17 }
  0x11   :  { %p510_p5 = scmp.ne.s32.totalorder %s24_s17, %s509_s20  ;;  %p515_p7 = scmp.lt.s32.totalorder %s509_s20, %s509_s20 }
  0x13   :  { %p516_p8 = por %p515_p7, %p514_p6 }
  0x15   :  { %p517_p9 = pnand %p516_p8, %p510_p5 }
  0x17   :  { %520 = shalt.err (!%p517_p9)
}
  0x18   :  { %26 = dma.hbm_to_vmem [thread:$0]  %s689_s0, 128, %s24_s17, [#allocation3]  }
  0x19   :  { %s529_s23 = scalar_lea.vmem %s51_s19, 2048  ;;  %p534_p11 = scmp.lt.s32.totalorder %s51_s19, %s51_s19 }
  0x1a   :  { %p530_p10 = scmp.ne.s32.totalorder %s51_s19, %s529_s23  ;;  %p535_p12 = scmp.lt.s32.totalorder %s529_s23, %s529_s23 }
  0x1c   :  { %p536_p13 = por %p535_p12, %p534_p11 }
  0x1e   :  { %p537_p0 = pnand %p536_p13, %p530_p10 }
  0x20   :  { %540 = shalt.err (!%p537_p0)
}
  0x21   :  { %56 = dma.hbm_to_vmem [thread:$0]  %s694_s5, 2048, %s51_s19, [#allocation6], %s568_s12, %s568_s12, %s569_s13  }
  0x22   :  { %561 = dma.done.wait [#allocation3], 128  }
  0x23   :  { %562 = vsyncadd [#allocation3], 4294967168 }
  0x24   :  { %563 = dma.done.wait [#allocation6], 4096  }
  0x25   :  { %564 = vsyncadd [#allocation6], 4294963200  ;;  %v572_v0 = vmov 0.0   ;;  %vm573_vm0 = vmmov 0   ;;  %v88_v1 = vld [vmem:[#allocation5 + $0x78] sm:$0xff]  ;;  %v87_v2 = vld [vmem:[#allocation5 + $0x70] sm:$0xff] }
  0x26   :  { %395 = vmatprep.subr.mxu0 %v572_v0  ;;  %427 = vmatprep.mubr.msk.f32.mxu0 %vm573_vm0, %v572_v0  ;;  %v86_v3 = vld [vmem:[#allocation5 + $0x68] sm:$0xff]  ;;  %v85_v4 = vld [vmem:[#allocation5 + $0x60] sm:$0xff]  ;;  %v84_v5 = vld [vmem:[#allocation5 + $0x58] sm:$0xff]  ;;  %s574_s10 = smov [#allocation8]  }
  0x27   :  { %430 = vmatprep.subr.mxu1 %v572_v0  ;;  %462 = vmatprep.mubr.msk.f32.mxu1 %vm573_vm0, %v572_v0  ;;  %v83_v6 = vld [vmem:[#allocation5 + $0x50] sm:$0xff]  ;;  %v82_v7 = vld [vmem:[#allocation5 + $0x48] sm:$0xff]  ;;  %v81_v8 = vld [vmem:[#allocation5 + $0x40] sm:$0xff]  ;;  %s344_s11 = sshll.u32 %s574_s10, 4  ;;  %s345_s11 = int_to_ptr.vmem [resolvable:$true] %s344_s11 }
  0x28   :  { %396 = vmatpush3.msra.mxu0 %v88_v1  ;;  %v80_v9 = vld [vmem:[#allocation5 + $0x38] sm:$0xff]  ;;  %v79_v10 = vld [vmem:[#allocation5 + $0x30] sm:$0xff]  ;;  %v78_v11 = vld [vmem:[#allocation5 + $0x28] sm:$0xff]  ;;  %s541_s12 = scalar_lea.vmem %s345_s11, 128  ;;  %p546_p2 = scmp.lt.s32.totalorder %s345_s11, %s345_s11 }
  0x29   :  { %397 = vmatprep.subr.mxu0 %v572_v0  ;;  %v77_v12 = vld [vmem:[#allocation5 + $0x20] sm:$0xff]  ;;  %v76_v13 = vld [vmem:[#allocation5 + $0x18] sm:$0xff]  ;;  %v75_v14 = vld [vmem:[#allocation5 + $0x10] sm:$0xff]  ;;  %p542_p1 = scmp.ne.s32.totalorder %s345_s11, %s541_s12  ;;  %p547_p3 = scmp.lt.s32.totalorder %s541_s12, %s541_s12 }
  0x2a   :  { %398 = vmatpush3.msra.mxu0 %v87_v2  ;;  %v74_v15 = vld [vmem:[#allocation5 + $0x8] sm:$0xff]  ;;  %v73_v16 = vld [vmem:[#allocation5] sm:$0xff]  ;;  %v72_v17 = vld [vmem:[#allocation2] sm:$0xff] }
  0x2b   :  { %399 = vmatprep.subr.mxu0 %v572_v0  ;;  %v218_v18 = vld [vmem:[#allocation7 + $0x78] sm:$0xff]  ;;  %v217_v19 = vld [vmem:[#allocation7 + $0x70] sm:$0xff]  ;;  %v216_v20 = vld [vmem:[#allocation7 + $0x68] sm:$0xff]  ;;  %p548_p4 = por %p547_p3, %p546_p2 }
  0x2c   :  { %400 = vmatpush3.msra.mxu0 %v86_v3  ;;  %431 = vmatpush3.msra.mxu1 %v218_v18  ;;  %v215_v21 = vld [vmem:[#allocation7 + $0x60] sm:$0xff]  ;;  %v214_v22 = vld [vmem:[#allocation7 + $0x58] sm:$0xff]  ;;  %v213_v23 = vld [vmem:[#allocation7 + $0x50] sm:$0xff] }
  0x2d   :  { %401 = vmatprep.subr.mxu0 %v572_v0  ;;  %432 = vmatprep.subr.mxu1 %v572_v0  ;;  %v212_v24 = vld [vmem:[#allocation7 + $0x48] sm:$0xff]  ;;  %v211_v25 = vld [vmem:[#allocation7 + $0x40] sm:$0xff]  ;;  %v210_v26 = vld [vmem:[#allocation7 + $0x38] sm:$0xff]  ;;  %p549_p5 = pnand %p548_p4, %p542_p1 }
  0x2e   :  { %402 = vmatpush3.msra.mxu0 %v85_v4  ;;  %433 = vmatpush3.msra.mxu1 %v217_v19  ;;  %v209_v27 = vld [vmem:[#allocation7 + $0x30] sm:$0xff]  ;;  %v208_v28 = vld [vmem:[#allocation7 + $0x28] sm:$0xff]  ;;  %v207_v29 = vld [vmem:[#allocation7 + $0x20] sm:$0xff] }
  0x2f   :  { %403 = vmatprep.subr.mxu0 %v572_v0  ;;  %434 = vmatprep.subr.mxu1 %v572_v0  ;;  %v206_v30 = vld [vmem:[#allocation7 + $0x18] sm:$0xff]  ;;  %v205_v31 = vld [vmem:[#allocation7 + $0x10] sm:$0xff]  ;;  %v204_v32 = vld [vmem:[#allocation7 + $0x8] sm:$0xff] }
  0x30   :  { %404 = vmatpush3.msra.mxu0 %v84_v5  ;;  %435 = vmatpush3.msra.mxu1 %v216_v20  ;;  %v203_v33 = vld [vmem:[#allocation7] sm:$0xff]  ;;  %v354_v34 = vld [vmem:[%s691_s2] ss:$0 sm:$0xff] }
  0x31   :  { %405 = vmatprep.subr.mxu0 %v572_v0  ;;  %436 = vmatprep.subr.mxu1 %v572_v0  ;;  %v355_v56 = vld [vmem:[%s692_s3] ss:$0 sm:$0xff] }
  0x32   :  { %406 = vmatpush3.msra.mxu0 %v83_v6  ;;  %437 = vmatpush3.msra.mxu1 %v215_v21  ;;  %v356_v58 = vld [vmem:[%s693_s4] ss:$0 sm:$0xff] }
  0x33   :  { %407 = vmatprep.subr.mxu0 %v572_v0  ;;  %438 = vmatprep.subr.mxu1 %v572_v0  ;;  %v357_v62 = vld [vmem:[%s695_s6] ss:$0 sm:$0xff] }
  0x34   :  { %408 = vmatpush3.msra.mxu0 %v82_v7  ;;  %439 = vmatpush3.msra.mxu1 %v214_v22  ;;  %v358_v20 = vld [vmem:[%s696_s7] ss:$0 sm:$0xff] }
  0x35   :  { %409 = vmatprep.subr.mxu0 %v572_v0  ;;  %440 = vmatprep.subr.mxu1 %v572_v0  ;;  %v359_v22 = vld [vmem:[%s697_s8] ss:$0 sm:$0xff] }
  0x36   :  { %410 = vmatpush3.msra.mxu0 %v81_v8  ;;  %441 = vmatpush3.msra.mxu1 %v213_v23 }
  0x37   :  { %411 = vmatprep.subr.mxu0 %v572_v0  ;;  %442 = vmatprep.subr.mxu1 %v572_v0 }
  0x38   :  { %412 = vmatpush3.msra.mxu0 %v80_v9  ;;  %443 = vmatpush3.msra.mxu1 %v212_v24 }
  0x39   :  { %413 = vmatprep.subr.mxu0 %v572_v0  ;;  %444 = vmatprep.subr.mxu1 %v572_v0 }
  0x3a   :  { %414 = vmatpush3.msra.mxu0 %v79_v10  ;;  %445 = vmatpush3.msra.mxu1 %v211_v25 }
  0x3b   :  { %415 = vmatprep.subr.mxu0 %v572_v0  ;;  %446 = vmatprep.subr.mxu1 %v572_v0 }
  0x3c   :  { %416 = vmatpush3.msra.mxu0 %v78_v11  ;;  %447 = vmatpush3.msra.mxu1 %v210_v26 }
  0x3d   :  { %417 = vmatprep.subr.mxu0 %v572_v0  ;;  %448 = vmatprep.subr.mxu1 %v572_v0 }
  0x3e   :  { %418 = vmatpush3.msra.mxu0 %v77_v12  ;;  %449 = vmatpush3.msra.mxu1 %v209_v27 }
  0x3f   :  { %419 = vmatprep.subr.mxu0 %v572_v0  ;;  %450 = vmatprep.subr.mxu1 %v572_v0 }
  0x40   :  { %420 = vmatpush3.msra.mxu0 %v76_v13  ;;  %451 = vmatpush3.msra.mxu1 %v208_v28 }
  0x41   :  { %421 = vmatprep.subr.mxu0 %v572_v0  ;;  %452 = vmatprep.subr.mxu1 %v572_v0 }
  0x42   :  { %422 = vmatpush3.msra.mxu0 %v75_v14  ;;  %453 = vmatpush3.msra.mxu1 %v207_v29 }
  0x43   :  { %423 = vmatprep.subr.mxu0 %v572_v0  ;;  %454 = vmatprep.subr.mxu1 %v572_v0 }
  0x44   :  { %424 = vmatpush3.msra.mxu0 %v74_v15  ;;  %455 = vmatpush3.msra.mxu1 %v206_v30 }
  0x45   :  { %425 = vmatprep.subr.mxu0 %v572_v0  ;;  %456 = vmatprep.subr.mxu1 %v572_v0 }
  0x46   :  { %426 = vmatpush3.msra.mxu0 %v73_v16  ;;  %457 = vmatpush3.msra.mxu1 %v205_v31 }
  0x47   :  { %428 = vmatmul.mubr.f32.vlgmr.msra.gmra.mxu0 %v72_v17  ;;  %458 = vmatprep.subr.mxu1 %v572_v0 }
  0x48   :  { %459 = vmatpush3.msra.mxu1 %v204_v32 }
  0x49   :  { %460 = vmatprep.subr.mxu1 %v572_v0 }
  0x4a   :  { %461 = vmatpush3.msra.mxu1 %v203_v33 }
 0x107   :  { %v164_v35 = vpop.f32.mrf.mxu0 }
 0x108   :  { %v165_v36 = vadd.f32 %v354_v34, %v164_v35 }
 0x109   :  { %v429_v37 = vpop.f32.mrf.mxu0 }
 0x10a   :  { %v168_v38 = vrot.slane %v165_v36, 4 }
 0x10c   :  { %v169_v39 = vadd.f32 %v168_v38, %v165_v36 }
 0x10e   :  { %v170_v40 = vrot.slane %v169_v39, 2 }
 0x110   :  { %v171_v41 = vadd.f32 %v170_v40, %v169_v39 }
 0x112   :  { %v172_v42 = vrot.slane %v171_v41, 1 }
 0x114   :  { %v173_v43 = vadd.f32 %v172_v42, %v171_v41 }
 0x116   :  { %v175_v44 = vmul.f32 0.125, %v173_v43 }
 0x118   :  { %v176_v45 = vsub.f32 %v165_v36, %v175_v44 }
 0x11a   :  { %v177_v46 = vmul.f32 %v176_v45, %v176_v45 }
 0x11c   :  { %v178_v47 = vrot.slane %v177_v46, 4 }
 0x11e   :  { %v179_v48 = vadd.f32 %v178_v47, %v177_v46 }
 0x120   :  { %v180_v49 = vrot.slane %v179_v48, 2 }
 0x122   :  { %v181_v50 = vadd.f32 %v180_v49, %v179_v48 }
 0x124   :  { %v182_v51 = vrot.slane %v181_v50, 1 }
 0x126   :  { %v183_v52 = vadd.f32 %v182_v51, %v181_v50 }
 0x128   :  { %v184_v53 = vmul.f32 0.125, %v183_v52 }
 0x12a   :  { %v185_v54 = vadd.f32 1e-05, %v184_v53 }
 0x12c   :  { %473 = vrsqrt.f32 %v185_v54 }
 0x139   :  { %v474_v55 = vpop.eup %473 }
 0x13a   :  { %v187_v57 = vmul.f32 %v474_v55, %v176_v45 }
 0x13c   :  { %v194_v59 = vmul.f32 %v355_v56, %v187_v57 }
 0x13e   :  { %v201_v60 = vadd.f32 %v356_v58, %v194_v59 }
 0x140   :  { %v202_v61 = vmax.f32 %v201_v60, 0.0 }
 0x142   :  { %463 = vmatmul.mubr.f32.vlgmr.msra.gmra.mxu1 %v202_v61 }
 0x202   :  { %v294_v63 = vpop.f32.mrf.mxu1 }
 0x203   :  { %v295_v0 = vadd.f32 %v357_v62, %v294_v63 }
 0x204   :  { %v464_v1 = vpop.f32.mrf.mxu1 }
 0x205   :  { %v298_v2 = vrot.slane %v295_v0, 4 }
 0x207   :  { %v299_v3 = vadd.f32 %v298_v2, %v295_v0 }
 0x209   :  { %v300_v4 = vrot.slane %v299_v3, 2 }
 0x20b   :  { %v301_v5 = vadd.f32 %v300_v4, %v299_v3 }
 0x20d   :  { %v302_v6 = vrot.slane %v301_v5, 1 }
 0x20f   :  { %v303_v7 = vadd.f32 %v302_v6, %v301_v5 }
 0x211   :  { %v304_v8 = vmul.f32 0.125, %v303_v7 }
 0x213   :  { %v305_v9 = vsub.f32 %v295_v0, %v304_v8 }
 0x215   :  { %v306_v10 = vmul.f32 %v305_v9, %v305_v9 }
 0x217   :  { %v307_v11 = vrot.slane %v306_v10, 4 }
 0x219   :  { %v308_v12 = vadd.f32 %v307_v11, %v306_v10 }
 0x21b   :  { %v309_v13 = vrot.slane %v308_v12, 2 }
 0x21d   :  { %v310_v14 = vadd.f32 %v309_v13, %v308_v12 }
 0x21f   :  { %v311_v15 = vrot.slane %v310_v14, 1 }
 0x221   :  { %v312_v16 = vadd.f32 %v311_v15, %v310_v14 }
 0x223   :  { %v313_v17 = vmul.f32 0.125, %v312_v16 }
 0x225   :  { %v314_v18 = vadd.f32 1e-05, %v313_v17 }
 0x227   :  { %475 = vrsqrt.f32 %v314_v18 }
 0x234   :  { %v476_v19 = vpop.eup %475 }
 0x235   :  { %v316_v21 = vmul.f32 %v476_v19, %v305_v9 }
 0x237   :  { %v323_v23 = vmul.f32 %v358_v20, %v316_v21 }
 0x239   :  { %v330_v24 = vadd.f32 %v359_v22, %v323_v23 }
 0x23b   :  { %v360_v25 = vmul.f32 -1.442695, %v330_v24 }
 0x23d   :  { %477 = vpow2.f32 %v360_v25 }
 0x24a   :  { %v478_v26 = vpop.eup %477 }
 0x24b   :  { %v334_v27 = vadd.f32 1.0, %v478_v26 }
 0x24d   :  { %479 = vrcp.f32 %v334_v27 }
 0x25a   :  { %v480_v28 = vpop.eup %479 }
 0x25b   :  { %337 = vst [vmem:[#allocation8] sm:$0xff] %v480_v28 }
 0x25c   :  { %552 = shalt.err (!%p549_p5)
}
 0x25d   :  { %347 = dma.vmem_to_hbm [thread:$0]  %s345_s11, 128, %s698_s9, [#allocation4]  }
 0x25e   :  { %565 = dma.done.wait [#allocation4], 128  }
 0x25f   :  { %566 = vsyncadd [#allocation4], 4294967168 }
 0x260   :  { %351 = vsyncpa [#allocation3], 1 }
 0x261   :  { %352 = vsyncpa [#allocation6], 1 }
 0x262   :  { %353 = vsyncpa [#allocation4], 1 }

</bundles_post_ra>
